<compile_context>
chip_gen: v5e
topology: v5e:2x2
jax: 0.10.0
libtpu: 0.0.40
codegen_flags: <defaults>
</compile_context>

<pallas_src>
import functools

import jax
import jax.numpy as jnp
from jax.experimental import pallas as pl
from jax.experimental.pallas import tpu as pltpu


# ---------------------------------------------------------------------------
# Kernel 1: per-example entity + attention pooling (row-gather DMA)
# ---------------------------------------------------------------------------
def _pool_kernel(subj_ref, obj_ref, seq_ref, att_s_ref, att_o_ref,
                 hcat_ref, tcat_ref):
    i = pl.program_id(0)
    sp = subj_ref[i]                                   # scalar int32 (SMEM)
    op = obj_ref[i]

    seq = seq_ref[0]                                   # [L, H] (input dtype)
    H = seq.shape[-1]

    # entity embeddings: dynamic row loads (single-mention "mean")
    hs = seq_ref[0, pl.ds(sp, 1), :]                   # [1, H]
    ts = seq_ref[0, pl.ds(op, 1), :]                   # [1, H]

    # attention rows for subject / object query positions (DMA'd by BlockSpec)
    h_att = att_s_ref[0, 0].astype(jnp.float32)        # [NH, L]
    t_att = att_o_ref[0, 0].astype(jnp.float32)        # [NH, L]
    ht = jnp.mean(h_att * t_att, axis=0, keepdims=True)            # [1, L]
    denom = jnp.sum(ht, axis=-1, keepdims=True) + jnp.float32(1e-5)
    ht = ht * pl.reciprocal(denom, approx=True)        # EUP, off the VPU path

    rs = jnp.dot(ht.astype(seq.dtype), seq,
                 preferred_element_type=jnp.float32)                # [1, H]

    hcat_ref[0, :, 0:H] = hs.astype(hcat_ref.dtype)
    hcat_ref[0, :, H:2 * H] = rs.astype(hcat_ref.dtype)
    tcat_ref[0, :, 0:H] = ts.astype(tcat_ref.dtype)
    tcat_ref[0, :, H:2 * H] = rs.astype(tcat_ref.dtype)


# ---------------------------------------------------------------------------
# Kernel 2: head / tail extractors  tanh(x @ W + b), whole batch in one step
# ---------------------------------------------------------------------------
def _extractor_kernel(hcat_ref, tcat_ref, wh_ref, bh_ref, wt_ref, bt_ref,
                      hs_ref, ts_ref):
    hs = jnp.tanh(jnp.dot(hcat_ref[...], wh_ref[...],
                          preferred_element_type=jnp.float32)
                  + bh_ref[...].astype(jnp.float32))
    ts = jnp.tanh(jnp.dot(tcat_ref[...], wt_ref[...],
                          preferred_element_type=jnp.float32)
                  + bt_ref[...].astype(jnp.float32))
    hs_ref[...] = hs.astype(hs_ref.dtype)
    ts_ref[...] = ts.astype(ts_ref.dtype)


# ---------------------------------------------------------------------------
# Kernel 3: bilinear Linear + final classifier + fused NLL loss
#           K-tiled grid (single M block = whole batch), f32 VMEM accumulator
# ---------------------------------------------------------------------------
def _classifier_loss_kernel(bl_ref, wbl_ref, bbl_ref, wfin_ref, bfin_ref, rel_ref,
                            logits_ref, loss_ref, acc_ref, *, inv_batch):
    k = pl.program_id(0)

    @pl.when(k == 0)
    def _():
        acc_ref[...] = jnp.zeros_like(acc_ref)

    acc_ref[...] += jnp.dot(bl_ref[...], wbl_ref[...],
                            preferred_element_type=jnp.float32)

    @pl.when(k == pl.num_programs(0) - 1)
    def _():
        fea = acc_ref[...] + bbl_ref[...].astype(jnp.float32)        # [B, F]
        logits = jnp.dot(fea, wfin_ref[...],
                         preferred_element_type=jnp.float32)
        logits = logits + bfin_ref[...].astype(jnp.float32)          # [B, Cpad]
        logits_ref[...] = logits.astype(logits_ref.dtype)

        # loss = mean_b( logsumexp(logits_b) - logits_b[rel_b] )
        m = jnp.max(logits, axis=-1, keepdims=True)                  # lane reduce
        lse = jnp.log(jnp.sum(jnp.exp(logits - m), axis=-1, keepdims=True)) + m
        cls = jax.lax.broadcasted_iota(jnp.int32, logits.shape, 1)
        onehot = (cls == rel_ref[...]).astype(jnp.float32)
        tgt = jnp.sum(logits * onehot, axis=-1, keepdims=True)       # [B, 1]
        loss_ref[0, 0] = jnp.sum(lse - tgt) * jnp.float32(inv_batch)


def _choose_tk(K, itemsize, fea_size):
    """Largest multiple-of-128 K tile dividing K such that the double-buffered
    W_bl tile stays ~<= 2 x 8 MiB (safe on v7x's 64 MiB VMEM)."""
    if K % 128 != 0:
        return K  # demo-sized fallback: single K block
    cap_elems = (8 * 1024 * 1024) // max(1, fea_size * itemsize)
    cap = max(128, min(2048, (cap_elems // 128) * 128))
    tk = min(K, cap)
    while K % tk != 0:
        tk -= 128
    return tk


# ---------------------------------------------------------------------------
# Wrapper: post-encoder forward of Bert4SemiRE3_adv -> (logits, loss)
# ---------------------------------------------------------------------------
def bert4semire3_adv_head_forward(sequence_output, attention, subj_pos, obj_pos,
                                  relations, params, block_size):
    B, L, H = sequence_output.shape
    NH = attention.shape[1]
    two_h = 2 * H
    dt = sequence_output.dtype
    emb_size = params["W_h"].shape[1]
    fea_size = params["W_bl"].shape[1]
    num_class = params["W_fin"].shape[1]

    # --- 1. entity / attention pooling (row-gather via scalar prefetch) ---
    # Query-major attention so a (1,1,NH,L) block indexed by subj/obj position
    # DMAs only the two needed rows per example.
    att_q = jnp.transpose(attention, (0, 2, 1, 3))      # [B, Lq, NH, Lk]

    hcat3, tcat3 = pl.pallas_call(
        _pool_kernel,
        out_shape=(jax.ShapeDtypeStruct((B, 1, two_h), dt),
                   jax.ShapeDtypeStruct((B, 1, two_h), dt)),
        grid_spec=pltpu.PrefetchScalarGridSpec(
            num_scalar_prefetch=2,
            grid=(B,),
            in_specs=[
                pl.BlockSpec((1, L, H), lambda i, sp, op: (i, 0, 0)),
                pl.BlockSpec((1, 1, NH, L), lambda i, sp, op: (i, sp[i], 0, 0)),
                pl.BlockSpec((1, 1, NH, L), lambda i, sp, op: (i, op[i], 0, 0)),
            ],
            out_specs=(pl.BlockSpec((1, 1, two_h), lambda i, sp, op: (i, 0, 0)),
                       pl.BlockSpec((1, 1, two_h), lambda i, sp, op: (i, 0, 0)))),
        compiler_params=pltpu.CompilerParams(dimension_semantics=("parallel",)),
    )(subj_pos.astype(jnp.int32), obj_pos.astype(jnp.int32),
      sequence_output, att_q, att_q)
    hcat = hcat3.reshape(B, two_h)
    tcat = tcat3.reshape(B, two_h)

    # --- 2. head / tail extractors (whole batch, single invocation) ---
    hs, ts = pl.pallas_call(
        _extractor_kernel,
        out_shape=(jax.ShapeDtypeStruct((B, emb_size), dt),
                   jax.ShapeDtypeStruct((B, emb_size), dt)),
    )(hcat, tcat, params["W_h"], params["b_h"], params["W_t"], params["b_t"])

    # --- 3. block-bilinear feature expansion (XLA glue; see TODO at top) ---
    NB = emb_size // block_size
    b1 = hs.reshape(B, NB, block_size)
    b2 = ts.reshape(B, NB, block_size)
    bl = (b1[:, :, :, None] * b2[:, :, None, :]).reshape(B, emb_size * block_size)

    # --- 4. bilinear + classifier + fused NLL loss (W_bl streamed exactly once) ---
    K = emb_size * block_size
    TK = _choose_tk(K, jnp.dtype(bl.dtype).itemsize, fea_size)

    c_pad = ((num_class + 127) // 128) * 128            # lane-dense logits store
    w_fin_p = jnp.zeros((fea_size, c_pad), params["W_fin"].dtype
                        ).at[:, :num_class].set(params["W_fin"])
    b_fin_p = jnp.full((1, c_pad), -1e9, jnp.float32
                       ).at[:, :num_class].set(params["b_fin"].astype(jnp.float32))
    rel2d = relations.astype(jnp.int32).reshape(B, 1)

    logits_pad, loss2d = pl.pallas_call(
        functools.partial(_classifier_loss_kernel, inv_batch=1.0 / B),
        out_shape=(jax.ShapeDtypeStruct((B, c_pad), jnp.float32),
                   jax.ShapeDtypeStruct((1, 1), jnp.float32)),
        grid_spec=pltpu.PrefetchScalarGridSpec(
            num_scalar_prefetch=0,
            grid=(K // TK,),
            in_specs=[pl.BlockSpec((B, TK), lambda k: (0, k)),
                      pl.BlockSpec((TK, fea_size), lambda k: (k, 0)),
                      pl.BlockSpec((1, fea_size), lambda k: (0, 0)),
                      pl.BlockSpec((fea_size, c_pad), lambda k: (0, 0)),
                      pl.BlockSpec((1, c_pad), lambda k: (0, 0)),
                      pl.BlockSpec((B, 1), lambda k: (0, 0))],
            out_specs=(pl.BlockSpec((B, c_pad), lambda k: (0, 0)),
                       pl.BlockSpec((1, 1), lambda k: (0, 0),
                                    memory_space=pltpu.MemorySpace.SMEM)),
            scratch_shapes=[pltpu.VMEM((B, fea_size), jnp.float32)]),
        compiler_params=pltpu.CompilerParams(dimension_semantics=("arbitrary",)),
    )(bl, params["W_bl"], params["b_bl"], w_fin_p, b_fin_p, rel2d)

    logits = logits_pad[:, :num_class]
    loss = loss2d[0, 0]
    return logits, loss


# ---------------------------------------------------------------------------
# Pure-JAX reference (mirrors the PyTorch encode()/forward() default path)
# ---------------------------------------------------------------------------
def _reference_forward(sequence_output, attention, subj_pos, obj_pos, relations,
                       params, block_size):
    B, L, H = sequence_output.shape
    emb_size = params["W_h"].shape[1]
    hs_l, ts_l = [], []
    for i in range(B):
        sp = int(subj_pos[i]); op = int(obj_pos[i])
        hs = sequence_output[i, sp]
        ts = sequence_output[i, op]
        h_att = attention[i, :, sp, :]
        t_att = attention[i, :, op, :]
        ht = jnp.mean(h_att * t_att, axis=0)
        ht = ht / (jnp.sum(ht) + 1e-5)
        rs = ht @ sequence_output[i]
        hs_l.append(jnp.concatenate([hs, rs]))
        ts_l.append(jnp.concatenate([ts, rs]))
    hcat = jnp.stack(hs_l, axis=0)
    tcat = jnp.stack(ts_l, axis=0)
    hs = jnp.tanh(hcat @ params["W_h"] + params["b_h"][0])
    ts = jnp.tanh(tcat @ params["W_t"] + params["b_t"][0])
    NB = emb_size // block_size
    b1 = hs.reshape(B, NB, block_size)
    b2 = ts.reshape(B, NB, block_size)
    bl = (b1[:, :, :, None] * b2[:, :, None, :]).reshape(B, emb_size * block_size)
    fea = bl @ params["W_bl"] + params["b_bl"][0]
    logits = fea @ params["W_fin"] + params["b_fin"][0]
    pred = jax.nn.log_softmax(logits, axis=1)
    loss = -jnp.mean(pred[jnp.arange(B), relations])
    return logits, loss


if __name__ == "__main__":
    key = jax.random.PRNGKey(0)
    B, L, H, NH = 8, 16, 32, 4            # batch, seq, hidden, attention heads
    E, Bk, F, C = 32, 8, 16, 19           # emb_size, block_size, fea_size, num_class

    ks = jax.random.split(key, 12)
    sequence_output = jax.random.normal(ks[0], (B, L, H), jnp.float32)
    attention = jax.nn.softmax(jax.random.normal(ks[1], (B, NH, L, L), jnp.float32),
                               axis=-1)
    subj_pos = jax.random.randint(ks[2], (B,), 0, L, dtype=jnp.int32)
    obj_pos = jax.random.randint(ks[3], (B,), 0, L, dtype=jnp.int32)
    relations = jax.random.randint(ks[4], (B,), 0, C, dtype=jnp.int32)

    scale = 0.1
    params = dict(
        W_h=scale * jax.random.normal(ks[5], (2 * H, E), jnp.float32),
        b_h=scale * jax.random.normal(ks[6], (1, E), jnp.float32),
        W_t=scale * jax.random.normal(ks[7], (2 * H, E), jnp.float32),
        b_t=scale * jax.random.normal(ks[8], (1, E), jnp.float32),
        W_bl=scale * jax.random.normal(ks[9], (E * Bk, F), jnp.float32),
        b_bl=scale * jax.random.normal(ks[10], (1, F), jnp.float32),
        W_fin=scale * jax.random.normal(ks[11], (F, C), jnp.float32),
        b_fin=jnp.zeros((1, C), jnp.float32),
    )

    logits, loss = bert4semire3_adv_head_forward(
        sequence_output, attention, subj_pos, obj_pos, relations, params, Bk)
    logits = jax.block_until_ready(logits)
    loss = jax.block_until_ready(loss)

    ref_logits, ref_loss = _reference_forward(
        sequence_output, attention, subj_pos, obj_pos, relations, params, Bk)
    ref_logits = jax.block_until_ready(ref_logits)
    ref_loss = jax.block_until_ready(ref_loss)

    assert jnp.allclose(logits, ref_logits, rtol=1e-2, atol=1e-2), (logits, ref_logits)
    assert jnp.allclose(loss, ref_loss, rtol=1e-2, atol=1e-2), (loss, ref_loss)

    print("KERNEL_OK")
</pallas_src>

<mosaic_0001>
module attributes {stable_mosaic.version = 11 : i64} {
  func.func @_pool_kernel(%arg0: i32, %arg1: memref<8xi32, #tpu.memory_space<smem>>, %arg2: memref<8xi32, #tpu.memory_space<smem>>, %arg3: memref<1x16x32xf32, #tpu.memory_space<vmem>>, %arg4: memref<1x1x4x16xf32, #tpu.memory_space<vmem>>, %arg5: memref<1x1x4x16xf32, #tpu.memory_space<vmem>>, %arg6: memref<1x1x64xf32, #tpu.memory_space<vmem>>, %arg7: memref<1x1x64xf32, #tpu.memory_space<vmem>>) attributes {dimension_semantics = [#tpu.dimension_semantics<parallel>], iteration_bounds = array<i64: 8>, scalar_prefetch = 2 : i64, scratch_operands = 0 : i64, tpu.core_type = #tpu.core_type<tc>, window_params = [{transform_indices = @transform_0, window_bounds = array<i64: 1, 16, 32>}, {transform_indices = @transform_1, window_bounds = array<i64: 1, 1, 4, 16>}, {transform_indices = @transform_2, window_bounds = array<i64: 1, 1, 4, 16>}, {transform_indices = @transform_3, window_bounds = array<i64: 1, 1, 64>}, {transform_indices = @transform_4, window_bounds = array<i64: 1, 1, 64>}]} {
    %0 = arith.index_cast %arg0 : i32 to index
    %1 = memref.load %arg1[%0] : memref<8xi32, #tpu.memory_space<smem>>
    %2 = arith.index_cast %arg0 : i32 to index
    %3 = memref.load %arg2[%2] : memref<8xi32, #tpu.memory_space<smem>>
    %c0 = arith.constant 0 : index
    %c0_0 = arith.constant 0 : index
    %c0_1 = arith.constant 0 : index
    %4 = vector.load %arg3[%c0, %c0_0, %c0_1] : memref<1x16x32xf32, #tpu.memory_space<vmem>>, vector<1x16x32xf32>
    %5 = vector.shape_cast %4 : vector<1x16x32xf32> to vector<16x32xf32>
    %c0_2 = arith.constant 0 : index
    %6 = arith.index_cast %1 : i32 to index
    %c0_3 = arith.constant 0 : index
    %7 = vector.load %arg3[%c0_2, %6, %c0_3] : memref<1x16x32xf32, #tpu.memory_space<vmem>>, vector<1x1x32xf32>
    %8 = vector.shape_cast %7 : vector<1x1x32xf32> to vector<1x32xf32>
    %c0_4 = arith.constant 0 : index
    %9 = arith.index_cast %3 : i32 to index
    %c0_5 = arith.constant 0 : index
    %10 = vector.load %arg3[%c0_4, %9, %c0_5] : memref<1x16x32xf32, #tpu.memory_space<vmem>>, vector<1x1x32xf32>
    %11 = vector.shape_cast %10 : vector<1x1x32xf32> to vector<1x32xf32>
    %c0_6 = arith.constant 0 : index
    %c0_7 = arith.constant 0 : index
    %c0_8 = arith.constant 0 : index
    %c0_9 = arith.constant 0 : index
    %12 = vector.load %arg4[%c0_6, %c0_7, %c0_8, %c0_9] : memref<1x1x4x16xf32, #tpu.memory_space<vmem>>, vector<1x1x4x16xf32>
    %13 = vector.shape_cast %12 : vector<1x1x4x16xf32> to vector<4x16xf32>
    %c0_10 = arith.constant 0 : index
    %c0_11 = arith.constant 0 : index
    %c0_12 = arith.constant 0 : index
    %c0_13 = arith.constant 0 : index
    %14 = vector.load %arg5[%c0_10, %c0_11, %c0_12, %c0_13] : memref<1x1x4x16xf32, #tpu.memory_space<vmem>>, vector<1x1x4x16xf32>
    %15 = vector.shape_cast %14 : vector<1x1x4x16xf32> to vector<4x16xf32>
    %16 = arith.mulf %13, %15 : vector<4x16xf32>
    %cst = arith.constant dense<0.000000e+00> : vector<16xf32>
    %17 = vector.multi_reduction <add>, %16, %cst [0] : vector<4x16xf32> to vector<16xf32>
    %18 = vector.shape_cast %17 : vector<16xf32> to vector<1x16xf32>
    %cst_14 = arith.constant 4.000000e+00 : f32
    %19 = vector.broadcast %cst_14 : f32 to vector<1x16xf32>
    %20 = arith.divf %18, %19 : vector<1x16xf32>
    %cst_15 = arith.constant dense<0.000000e+00> : vector<1xf32>
    %21 = vector.multi_reduction <add>, %20, %cst_15 [1] : vector<1x16xf32> to vector<1xf32>
    %22 = vector.shape_cast %21 : vector<1xf32> to vector<1x1xf32>
    %cst_16 = arith.constant 9.99999974E-6 : f32
    %23 = vector.broadcast %cst_16 : f32 to vector<1x1xf32>
    %24 = arith.addf %22, %23 : vector<1x1xf32>
    %25 = tpu.reciprocal %24 {approx = true} : vector<1x1xf32> -> vector<1x1xf32>
    %26 = vector.broadcast %25 : vector<1x1xf32> to vector<1x16xf32>
    %27 = arith.mulf %20, %26 : vector<1x16xf32>
    %cst_17 = arith.constant dense<0.000000e+00> : vector<1x32xf32>
    %28 = tpu.matmul %27, %5, %cst_17 {dimension_numbers = #tpu.dot_dimension_numbers<[1], [0], [0], [1], [0, 0, 1, 1], [], []>} : vector<1x16xf32>, vector<16x32xf32>, vector<1x32xf32> -> vector<1x32xf32>
    %c0_18 = arith.constant 0 : index
    %c0_19 = arith.constant 0 : index
    %c0_20 = arith.constant 0 : index
    %29 = vector.load %arg6[%c0_18, %c0_19, %c0_20] : memref<1x1x64xf32, #tpu.memory_space<vmem>>, vector<1x1x32xf32>
    %30 = vector.shape_cast %29 : vector<1x1x32xf32> to vector<1x32xf32>
    %31 = vector.shape_cast %8 : vector<1x32xf32> to vector<1x1x32xf32>
    tpu.vector_store %arg6[%c0_18, %c0_19, %c0_20], %31 {strides = array<i32>} : memref<1x1x64xf32, #tpu.memory_space<vmem>>, vector<1x1x32xf32>,
    %c0_21 = arith.constant 0 : index
    %c0_22 = arith.constant 0 : index
    %c32 = arith.constant 32 : index
    %32 = vector.load %arg6[%c0_21, %c0_22, %c32] : memref<1x1x64xf32, #tpu.memory_space<vmem>>, vector<1x1x32xf32>
    %33 = vector.shape_cast %32 : vector<1x1x32xf32> to vector<1x32xf32>
    %34 = vector.shape_cast %28 : vector<1x32xf32> to vector<1x1x32xf32>
    tpu.vector_store %arg6[%c0_21, %c0_22, %c32], %34 {strides = array<i32>} : memref<1x1x64xf32, #tpu.memory_space<vmem>>, vector<1x1x32xf32>,
    %c0_23 = arith.constant 0 : index
    %c0_24 = arith.constant 0 : index
    %c0_25 = arith.constant 0 : index
    %35 = vector.load %arg7[%c0_23, %c0_24, %c0_25] : memref<1x1x64xf32, #tpu.memory_space<vmem>>, vector<1x1x32xf32>
    %36 = vector.shape_cast %35 : vector<1x1x32xf32> to vector<1x32xf32>
    %37 = vector.shape_cast %11 : vector<1x32xf32> to vector<1x1x32xf32>
    tpu.vector_store %arg7[%c0_23, %c0_24, %c0_25], %37 {strides = array<i32>} : memref<1x1x64xf32, #tpu.memory_space<vmem>>, vector<1x1x32xf32>,
    %c0_26 = arith.constant 0 : index
    %c0_27 = arith.constant 0 : index
    %c32_28 = arith.constant 32 : index
    %38 = vector.load %arg7[%c0_26, %c0_27, %c32_28] : memref<1x1x64xf32, #tpu.memory_space<vmem>>, vector<1x1x32xf32>
    %39 = vector.shape_cast %38 : vector<1x1x32xf32> to vector<1x32xf32>
    %40 = vector.shape_cast %28 : vector<1x32xf32> to vector<1x1x32xf32>
    tpu.vector_store %arg7[%c0_26, %c0_27, %c32_28], %40 {strides = array<i32>} : memref<1x1x64xf32, #tpu.memory_space<vmem>>, vector<1x1x32xf32>,
    return
  }
  func.func @transform_0(%arg0: i32, %arg1: memref<8xi32, #tpu.memory_space<smem>>, %arg2: memref<8xi32, #tpu.memory_space<smem>>) -> (i32, i32, i32) {
    %c0_i32 = arith.constant 0 : i32
    %c0_i32_0 = arith.constant 0 : i32
    %c0_i32_1 = arith.constant 0 : i32
    return %arg0, %c0_i32, %c0_i32_0 : i32, i32, i32
  }
  func.func @transform_1(%arg0: i32, %arg1: memref<8xi32, #tpu.memory_space<smem>>, %arg2: memref<8xi32, #tpu.memory_space<smem>>) -> (i32, i32, i32, i32) {
    %0 = arith.index_cast %arg0 : i32 to index
    %1 = memref.load %arg1[%0] : memref<8xi32, #tpu.memory_space<smem>>
    %c0_i32 = arith.constant 0 : i32
    %c0_i32_0 = arith.constant 0 : i32
    %c0_i32_1 = arith.constant 0 : i32
    return %arg0, %1, %c0_i32, %c0_i32_0 : i32, i32, i32, i32
  }
  func.func @transform_2(%arg0: i32, %arg1: memref<8xi32, #tpu.memory_space<smem>>, %arg2: memref<8xi32, #tpu.memory_space<smem>>) -> (i32, i32, i32, i32) {
    %0 = arith.index_cast %arg0 : i32 to index
    %1 = memref.load %arg2[%0] : memref<8xi32, #tpu.memory_space<smem>>
    %c0_i32 = arith.constant 0 : i32
    %c0_i32_0 = arith.constant 0 : i32
    %c0_i32_1 = arith.constant 0 : i32
    return %arg0, %1, %c0_i32, %c0_i32_0 : i32, i32, i32, i32
  }
  func.func @transform_3(%arg0: i32, %arg1: memref<8xi32, #tpu.memory_space<smem>>, %arg2: memref<8xi32, #tpu.memory_space<smem>>) -> (i32, i32, i32) {
    %c0_i32 = arith.constant 0 : i32
    %c0_i32_0 = arith.constant 0 : i32
    %c0_i32_1 = arith.constant 0 : i32
    return %arg0, %c0_i32, %c0_i32_0 : i32, i32, i32
  }
  func.func @transform_4(%arg0: i32, %arg1: memref<8xi32, #tpu.memory_space<smem>>, %arg2: memref<8xi32, #tpu.memory_space<smem>>) -> (i32, i32, i32) {
    %c0_i32 = arith.constant 0 : i32
    %c0_i32_0 = arith.constant 0 : i32
    %c0_i32_1 = arith.constant 0 : i32
    return %arg0, %c0_i32, %c0_i32_0 : i32, i32, i32
  }
}

</mosaic_0001>

<bundles_post_ra>
// kernel: tpu_custom_call.1
= control target key start
LH: loop header
LB: loop body
LE: loop exit
PB: predicated region body
PF: predicated region fallthrough
CT: control target
= control target key end

     0   :  { %s992_s27 = smov [#allocation3]   ;;  %s993_s28 = smov [#allocation4]   ;;  %s1403_s0 = inlined_call_operand.hbm [shape: s32[8], index: 0, kind: input, shape index: {}]   ;;  %s1404_s2 = inlined_call_operand.hbm [shape: f32[8,16,32], index: 2, kind: input, shape index: {}]   ;;  %s1405_s3 = inlined_call_operand.hbm [shape: f32[8,16,4,16], index: 3, kind: input, shape index: {}]   ;;  %s1406_s4 = inlined_call_operand.hbm [shape: f32[8,16,4,16], index: 4, kind: input, shape index: {}]   ;;  %s1407_s5 = inlined_call_operand.hbm [shape: f32[8,1,64], index: 5, kind: output, shape index: {0}]   ;;  %s1408_s6 = inlined_call_operand.hbm [shape: f32[8,1,64], index: 6, kind: output, shape index: {1}]   ;;  %s1409_s1 = inlined_call_operand.hbm [shape: s32[8], index: 1, kind: input, shape index: {}]  }
   0x1   :  { %1425 = sst [smem:[#allocation32_spill]] %s1404_s2  ;;  %s13_s23 = sshll.u32 %s1403_s0, 4  ;;  %s14_s23 = int_to_ptr.hbm [resolvable:$true] %s13_s23 }
   0x2   :  { %1426 = sst [smem:[#allocation33_spill]] %s1405_s3  ;;  %s18_s26 = sshll.u32 %s1409_s1, 4  ;;  %s19_s26 = int_to_ptr.hbm [resolvable:$true] %s18_s26 }
   0x3   :  { %1427 = sst [smem:[#allocation34_spill]] %s1407_s5 }
   0x4   :  { %1428 = sst [smem:[#allocation35_spill]] %s1408_s6 }
   0x5   :  { %16 = dma.hbm_to_smem %s14_s23, 16, %s992_s27, [#allocation2] }
   0x6   :  { %21 = dma.hbm_to_smem %s19_s26, 16, %s993_s28, [#allocation2] }
   0x7   :  { %930 = dma.done.wait [#allocation2], 32 }
   0x8   :  { %931 = vsyncadd [#allocation2], 4294967264 }
   0x9   :  { %24 = sfence }
   0xa   :  { %25 = vsyncpa [#allocation6], 0 }
   0xb   :  { %27 = vsyncpa [#allocation6 + $0x1], 0 }
   0xc   :  { %28 = vsyncpa [#allocation9], 0 }
   0xd   :  { %30 = vsyncpa [#allocation9 + $0x1], 0 }
   0xe   :  { %31 = vsyncpa [#allocation7], 0 }
   0xf   :  { %33 = vsyncpa [#allocation7 + $0x1], 0 }
  0x10   :  { %34 = vsyncpa [#allocation13], 0 }
  0x11   :  { %36 = vsyncpa [#allocation13 + $0x1], 0  ;;  %s1039_s0 = smov 0   ;;  %s1041_s1 = smov 0  }
  0x12   :  { %s1043_s29 = smov 0   ;;  %s1045_s30 = smov 0  }
  0x13   :  { %s1047_s7 = smov 0   ;;  %s1049_s8 = smov 0  }
  0x14   :  { %s1051_s9 = smov 0   ;;  %s1053_s10 = smov 0  }
  0x15   :  { %s1055_s11 = smov 0   ;;  %s1057_s12 = smov 0  }
  0x16 LB: > { %1429 = sst [smem:[#allocation24_spill]] %s970_s7  ;;  %s1088_s13 = sadd.s32 4294967295, %s990_s12   ;;  %s990_s12 = sphi %s1057_s12, %s1466_s12   ;;  %s986_s11 = sphi %s1055_s11, %s1471_s11   ;;  %s982_s10 = sphi %s1053_s10, %s1476_s10   ;;  %s978_s9 = sphi %s1051_s9, %s1475_s9   ;;  %s974_s8 = sphi %s1049_s8, %s1469_s8   ;;  %s970_s7 = sphi %s1047_s7, %s1468_s7   ;;  %s966_s30 = sphi %s1045_s30, %s1467_s30   ;;  %s962_s29 = sphi %s1043_s29, %s1474_s29   ;;  %s958_s1 = sphi %s1041_s1, %s1473_s1   ;;  %s954_s0 = sphi %s1039_s0, %s1472_s0  }
  0x17   : > { %1430 = sst [smem:[#allocation25_spill]] %s974_s8  ;;  %s1091_s14 = sadd.s32 1, %s990_s12  }
  0x18   : > { %1431 = sst [smem:[#allocation26_spill]] %s986_s11  ;;  %s1095_s15 = ssub.s32 %s990_s12, %s1091_s14 }
  0x19   : > { %1432 = sst [smem:[#allocation27_spill]] %s1091_s14  ;;  %p1415_p0 = scmp.eq.s32.totalorder %s990_s12, 0 }
  0x1a   : > { %p47_p1 = scmp.eq.s32.totalorder %s1095_s15, 0  ;;  %p1419_p2 = scmp.eq.s32.totalorder %s1088_s13, 0 }
  0x1b   : > { %s72_s16 = sld [smem:[#allocation3 + %s990_s12]]  ;;  %s79_s17 = sadd.s32 1, %s974_s8 }
  0x1c   : > { %s73_s18 = sld [smem:[#allocation3 + %s1091_s14]]  ;;  %p86_p3 = scmp.ne.s32.totalorder %s974_s8, %s970_s7 }
  0x1d   : > { %p92_p4 = scmp.ne.s32.totalorder %s970_s7, %s966_s30  ;;  %s1107_s19 = sld [smem:[#allocation4 + %s1091_s14]] }
  0x1e   : > { %p1111_p5 = por %p86_p3, %p1415_p0  ;;  %p1420_p7 = scmp.lt.s32.totalorder %s990_s12, 8 }
  0x1f   : > { %p1117_p6 = por %p92_p4, %p1419_p2  ;;  %s1123_s22 = sshll.u32 %s990_s12, 4 }
  0x20   : > { %s220_s23 = sand.u32 1, %s990_s12   ;;  %s222_s24 = sand.u32 1, %s974_s8  }
  0x21   : > { %s1434_s21 = scalar_select %p1117_p6, 1, 0 }
  0x22   : > { %s75_s25 = ssub.s32 %s72_s16, %s73_s18  ;;  %s579_s26 = sshll.u32 %s222_s24, 2 }
  0x23   : > { %1435 = sst [smem:[#allocation28_spill]] %s1434_s21  ;;  %s76_s27 = sor.u32 %s75_s25, %s1095_s15 }
  0x24   : > { %p77_p8 = scmp.eq.s32.totalorder %s76_s27, 0  ;;  %s224_s28 = scalar_lea.vmem [#allocation8], %s579_s26 }
  0x25   : > { %s1128_s30 = sshll.u32 %s224_s28, 4  ;;  %p1147_p9 = pnand %p1420_p7, %p1111_p5 }
  0x26   : > { %1436 = sst [smem:[#allocation29_spill]] %s1128_s30  ;;  %p585_p10 = scmp.ge.s32.totalorder %s990_s12, 1 }
  0x27   : > { %s594_s14 = scalar_select %p1111_p5, [#allocation3], [#allocation14] }
  0x28   : > { %s1133_s6 = scalar_select %p77_p8, %s974_s8, %s79_s17  }
  0x29   : > { %s595_s16 = scalar_select %p1111_p5, %s990_s12, 0 }
  0x2a   : > { %1437 = sst [smem:[#allocation30_spill]] %s1133_s6  ;;  %s1478_s14 = smov (!%p1420_p7, %s594_s14), [#allocation16] }
  0x2b   : > { %s1480_s16 = smov (!%p1420_p7, %s595_s16), 0  ;;  %p262_p11 = scmp.lt.s32.totalorder %s990_s12, 9 }
  0x2c   : > { %s225_s18 = sld [smem:[%s1478_s14 + %s1480_s16]]  ;;  %s573_s25 = sadd.s32 4294967294, %s990_s12  }
  0x2d   : > { %p1153_p12 = pnand %p585_p10, %p262_p11  ;;  %s49_s27 = sadd.s32 1, %s986_s11 }
  0x2e   : > { %p1422_p13 = scmp.ne.s32.totalorder %s986_s11, %s982_s10  ;;  %s1440_s3 = sld [smem:[#allocation33_spill]] }
  0x2f   : > { %p1421_p3 = scmp.ne.s32.totalorder %s982_s10, %s978_s9  ;;  %p748_p10 = pneg %p1147_p9 }
  0x30   : > { %p1172_p4 = por %p1415_p0, %p1422_p13 }
  0x31   : > { %p1181_p5 = por %p1419_p2, %p1421_p3 }
  0x32   : > { %s229_s26 = sadd.s32 %s1123_s22, %s225_s18  ;;  %s1185_s18 = scalar_lea.sflag [#allocation9], %s220_s23 }
  0x33   : > { %s581_s20 = sshll.u32 %s229_s26, 2 }
  0x34   : > { %s231_s6 = scalar_lea.hbm %s1440_s3, %s581_s20  ;;  %s751_s28 = scalar_lea.hbm %s1440_s3, 512 }
  0x35   : > { %s233_s8 = sshll.u32 %s231_s6, 4  ;;  %s234_s8 = int_to_ptr.hbm [resolvable:$true] %s233_s8 }
  0x36   : > { %s744_s26 = sshra.s32 %s234_s8, 4  ;;  %s745_s26 = int_to_ptr.hbm [resolvable:$true] %s744_s26 }
  0x37   : > { %s746_s30 = scalar_lea.hbm %s745_s26, 4  ;;  %p752_p2 = scmp.lt.s32.totalorder %s745_s26, %s1440_s3 }
  0x38   : > { %p747_p8 = scmp.ne.s32.totalorder %s745_s26, %s746_s30  ;;  %p753_p7 = scmp.lt.s32.totalorder %s751_s28, %s746_s30 }
  0x3a   : > { %p749_p11 = pnand %p748_p10, %p747_p8  ;;  %p754_p3 = por %p753_p7, %p752_p2 }
  0x3c   : > { %p750_p0 = pneg %p749_p11 }
  0x3e   : > { %p755_p13 = pnand %p754_p3, %p750_p0 }
  0x40   : > { %758 = shalt.err (!%p755_p13)
}
  0x41   : > { %s1443_s23 = sld [smem:[#allocation29_spill]]  ;;  %p146_p0 = scmp.eq.s32.totalorder %s1088_s13, 7 }
  0x42   : > { %s1203_s5 = scalar_select %p47_p1, %s986_s11, %s49_s27  }
  0x43   : > { %p152_p2 = scmp.eq.s32.totalorder %s573_s25, 7  ;;  %s198_s21 = sand.u32 1, %s986_s11  }
  0x44   : > { %1445 = sst [smem:[#allocation31_spill]] %s1203_s5  ;;  %p1447_p7 = scmp.ne.s32.totalorder %s986_s11, %s982_s10 }
  0x45   : > { %s1446_s2 = sld [smem:[#allocation32_spill]]  ;;  %p1449_p3 = scmp.ne.s32.totalorder %s982_s10, %s978_s9 }
  0x46   : > { %p1214_p13 = por %p146_p0, %p1447_p7  ;;  %p1451_p1 = scmp.lt.s32.totalorder %s990_s12, 8 }
  0x47   : > { %s1444_s7 = int_to_ptr.vmem [resolvable:$true] %s1443_s23  ;;  %p1221_p8 = por %p152_p2, %p1449_p3 }
  0x48   : > { %615 = dma.hbm_to_vmem [thread:$0]  (!%p1147_p9), %s234_s8, 64, %s1444_s7, %s1185_s18  }
  0x49   : > { %s1450_s20 = scalar_select %p1221_p8, 1, 0 }
  0x4a   : > { %s576_s7 = sshll.u32 %s198_s21, 4  ;;  %p1229_p9 = pnand %p1451_p1, %p1172_p4 }
  0x4b   : > { %s207_s30 = scalar_lea.hbm %s1446_s2, %s1123_s22  ;;  %s202_s27 = scalar_lea.vmem [#allocation5], %s576_s7 }
  0x4c   : > { %s208_s8 = sshll.u32 %s207_s30, 4  ;;  %s210_s25 = sshll.u32 %s202_s27, 4  ;;  %s209_s8 = int_to_ptr.hbm [resolvable:$true] %s208_s8  ;;  %s211_s25 = int_to_ptr.vmem [resolvable:$true] %s210_s25 }
  0x4d   : > { %s199_s23 = scalar_lea.sflag [#allocation6], %s198_s21  ;;  %s774_s17 = sshra.s32 %s209_s8, 4  ;;  %s775_s17 = int_to_ptr.hbm [resolvable:$true] %s774_s17 }
  0x4e   : > { %s776_s26 = scalar_lea.hbm %s775_s17, 16  ;;  %p778_p11 = pneg %p1229_p9 }
  0x4f   : > { %p777_p10 = scmp.ne.s32.totalorder %s775_s17, %s776_s26  ;;  %s781_s27 = scalar_lea.hbm %s1446_s2, 128 }
  0x50   : > { %p782_p4 = scmp.lt.s32.totalorder %s775_s17, %s1446_s2  ;;  %p783_p7 = scmp.lt.s32.totalorder %s781_s27, %s776_s26 }
  0x51   : > { %p779_p0 = pnand %p778_p11, %p777_p10 }
  0x52   : > { %p784_p3 = por %p783_p7, %p782_p4 }
  0x53   : > { %p780_p2 = pneg %p779_p0 }
  0x55   : > { %p785_p1 = pnand %p784_p3, %p780_p2 }
  0x57   : > { %788 = shalt.err (!%p785_p1)
}
  0x58   : > { %s994_s21 = smov 128   ;;  %s995_s3 = smov 8  }
  0x59   : > { %610 = dma.hbm_to_vmem [thread:$0]  (!%p1229_p9), %s209_s8, 256, %s211_s25, %s199_s23, %s994_s21, %s994_s21, %s995_s3  }
  0x5a   : > { %s102_s17 = sld [smem:[#allocation4 + %s990_s12]]  ;;  %p116_p10 = scmp.ne.s32.totalorder %s962_s29, %s958_s1 }
  0x5b   : > { %p122_p11 = scmp.ne.s32.totalorder %s958_s1, %s954_s0  ;;  %p1453_p0 = scmp.eq.s32.totalorder %s990_s12, 0 }
  0x5c   : > { %p1454_p4 = scmp.eq.s32.totalorder %s1088_s13, 0  ;;  %s109_s27 = sadd.s32 1, %s962_s29 }
  0x5d   : > { %p118_p2 = por %p116_p10, %p1453_p0  ;;  %s244_s2 = sand.u32 1, %s962_s29  }
  0x5e   : > { %p1252_p7 = por %p122_p11, %p1454_p4  ;;  %p1456_p1 = scmp.lt.s32.totalorder %s990_s12, 8 }
  0x5f   : > { %s597_s30 = scalar_select %p118_p2, [#allocation4], [#allocation15] }
  0x60   : > { %s105_s7 = ssub.s32 %s102_s17, %s1107_s19  ;;  %p1262_p9 = pnand %p1456_p1, %p118_p2 }
  0x61   : > { %s106_s14 = sor.u32 %s105_s7, %s1095_s15  ;;  %p1458_p10 = pmov %p1456_p1 }
  0x62   : > { %p107_p3 = scmp.eq.s32.totalorder %s106_s14, 0  ;;  %p1459_p11 = pmov %p1456_p1 }
  0x63   : > { %s598_s0 = scalar_select %p118_p2, %s990_s12, 0 }
  0x64   : > { %s1268_s25 = scalar_select %p107_p3, %s962_s29, %s109_s27  }
  0x65   : > { %s1482_s30 = smov (!%p1458_p10, %s597_s30), [#allocation17]  ;;  %s1484_s0 = smov (!%p1459_p11, %s598_s0), 0 }
  0x66   : > { %s582_s28 = sshll.u32 %s244_s2, 2  ;;  %s247_s23 = sld [smem:[%s1482_s30 + %s1484_s0]] }
  0x67   : > { %s246_s19 = scalar_lea.vmem [#allocation10], %s582_s28  ;;  %p808_p2 = pneg %p1262_p9 }
  0x68   : > { %s257_s21 = sshll.u32 %s246_s19, 4  ;;  %s258_s21 = int_to_ptr.vmem [resolvable:$true] %s257_s21 }
  0x6c   : > { %s251_s15 = sadd.s32 %s1123_s22, %s247_s23  ;;  %s811_s22 = scalar_lea.hbm %s1406_s4, 512 }
  0x6d   : > { %s584_s3 = sshll.u32 %s251_s15, 2 }
  0x6e   : > { %s253_s14 = scalar_lea.hbm %s1406_s4, %s584_s3 }
  0x6f   : > { %s255_s5 = sshll.u32 %s253_s14, 4  ;;  %s256_s5 = int_to_ptr.hbm [resolvable:$true] %s255_s5 }
  0x70   : > { %s804_s27 = sshra.s32 %s256_s5, 4  ;;  %s805_s27 = int_to_ptr.hbm [resolvable:$true] %s804_s27 }
  0x71   : > { %s806_s11 = scalar_lea.hbm %s805_s27, 4  ;;  %p812_p1 = scmp.lt.s32.totalorder %s805_s27, %s1406_s4 }
  0x72   : > { %p807_p0 = scmp.ne.s32.totalorder %s805_s27, %s806_s11  ;;  %p813_p10 = scmp.lt.s32.totalorder %s811_s22, %s806_s11 }
  0x74   : > { %p809_p4 = pnand %p808_p2, %p807_p0  ;;  %p814_p11 = por %p813_p10, %p812_p1 }
  0x76   : > { %p810_p3 = pneg %p809_p4 }
  0x78   : > { %p815_p8 = pnand %p814_p11, %p810_p3 }
  0x7a   : > { %818 = shalt.err (!%p815_p8)
}
  0x7b   : > { %620 = dma.hbm_to_vmem [thread:$0]  (!%p1262_p9), %s256_s5, 64, %s258_s21, %s1185_s18  }
  0x7c   : > { %266 = sbr.rel (%p1153_p12) target bundleno = 547 (0x223), region = 32  ;;  %s1292_s23 = sand.u32 (!%p1153_p12), 1, %s982_s10  }
  0x7d   : > { %s586_s19 = sshll.u32 (!%p1153_p12), %s1292_s23, 4  ;;  %s269_s15 = scalar_lea.sflag (!%p1153_p12), [#allocation6], %s1292_s23 }
  0x7e   : > { %s1296_s3 = scalar_lea.vmem (!%p1153_p12), [#allocation5], %s586_s19 }
  0x81   : > { %933 = dma.done.wait (%p1181_p5), %s269_s15, 256  }
  0x82   : > { %935 = vsyncadd (%p1181_p5), %s269_s15, 4294967040  ;;  %s1460_s11 = sld [smem:[#allocation24_spill]]  ;;  %s278_s24 = sand.u32 1, %s1088_s13  }
  0x83   : > { %s279_s21 = scalar_lea.sflag [#allocation9], %s278_s24 }
  0x88   : > { %s280_s5 = sand.u32 1, %s1460_s11  }
  0x89   : > { %s587_s8 = sshll.u32 %s280_s5, 2 }
  0x8a   : > { %s282_s17 = scalar_lea.vmem [#allocation8], %s587_s8 }
  0x8b   : > { %937 = dma.done.wait (%p1117_p6), %s279_s21, 64  }
  0x8c   : > { %939 = vsyncadd (%p1117_p6), %s279_s21, 4294967232  ;;  %s290_s7 = sand.u32 1, %s958_s1  }
  0x8d   : > { %s588_s14 = sshll.u32 %s290_s7, 2 }
  0x8e   : > { %s292_s27 = scalar_lea.vmem [#allocation10], %s588_s14 }
  0x8f   : > { %941 = dma.done.wait (%p1252_p7), %s279_s21, 64  }
  0x90   : > { %943 = vsyncadd (%p1252_p7), %s279_s21, 4294967232  ;;  %v996_v0 = vmov 4.0   ;;  %v341_v2 = vld [vmem:[%s282_s17] sm:$0xf]  ;;  %v342_v3 = vld [vmem:[%s292_s27] sm:$0xf] }
  0x91   : > { %716 = vrcp.f32 %v996_v0  ;;  %vm344_vm0 = vcmask 125952   ;;  %v343_v4 = vmul.f32 %v342_v3, %v341_v2  ;;  %vm360_vm2 = vcmask 130048   ;;  %v336_v19 = vld [vmem:[%s1296_s3 + $0x8] sm:$0xff]  ;;  %v335_v20 = vld [vmem:[%s1296_s3] sm:$0xff]  ;;  %s997_s16 = smov 32   ;;  %s333_s26 = sld [smem:[#allocation3 + %s1088_s13]] }
  0x92   : > { %384 = vmatpush.msra.mxu0 %v336_v19  ;;  %s334_s2 = sld [smem:[#allocation4 + %s1088_s13]]  ;;  %vm390_vm3 = vcmask 253952   ;;  %s324_s0 = scalar_lea.vmem [#allocation11], %s1292_s23  ;;  %vm396_vm4 = vcmask 516352  }
  0x93   : > { %v345_v6 = vsel %vm344_vm0, %v343_v4, 0.0  ;;  %s1321_s28 = scalar_lea.vmem [#allocation12], %s1292_s23  ;;  %s1462_s11 = sld [smem:[#allocation34_spill]] }
  0x94   : > { %v346_v8 = vrot.slane %v345_v6, 4  ;;  %385 = vmatpush.msra.mxu0 %v335_v20  ;;  %s1464_s21 = sld [smem:[#allocation35_spill]]  ;;  %s428_s14 = sshll.u32 %s1321_s28, 4  ;;  %s1335_s14 = int_to_ptr.vmem [resolvable:$true] %s428_s14 }
  0x96   : > { %v347_v10 = vadd.f32 %v346_v8, %v345_v6 }
  0x97   : > { %v717_v1 = vpop.eup %716  ;;  %s337_s30 = scalar_lea.vmem %s1296_s3, %s333_s26 [#allocation5] }
  0x98   : > { %v353_v5 = vmul.f32 4.0, %v717_v1  ;;  %v348_v11 = vrot.slane %v347_v10, 2  ;;  %vm357_vm1 = vweird.f32 %v717_v1  ;;  %s339_s22 = scalar_lea.vmem %s1296_s3, %s334_s2 [#allocation5]  ;;  %v338_v26 = vld [vmem:[%s337_s30] sm:$0x1]  ;;  %s415_s3 = sshll.u32 %s324_s0, 4  ;;  %s416_s3 = int_to_ptr.vmem [resolvable:$true] %s415_s3 }
  0x99   : > { %v340_v27 = vld [vmem:[%s339_s22] sm:$0x1]  ;;  %391 = vst.msk [vmem:[%s324_s0] sm:$0x1] %vm390_vm3, %v338_v26  ;;  %s1463_s18 = smov %s1462_s11  ;;  %s413_s24 = scalar_lea.hbm %s1462_s11, %s1088_s13 }
  0x9a   : > { %v354_v7 = vsub.f32 1.0, %v353_v5  ;;  %v349_v13 = vadd.f32 %v348_v11, %v347_v10  ;;  %398 = vst.msk [vmem:[%s1321_s28] sm:$0x1] %vm390_vm3, %v340_v27  ;;  %s426_s17 = scalar_lea.hbm %s1464_s21, %s1088_s13  ;;  %s417_s7 = sshll.u32 %s413_s24, 4  ;;  %s418_s7 = int_to_ptr.hbm [resolvable:$true] %s417_s7 }
  0x9b   : > { %s1333_s27 = sshll.u32 %s426_s17, 4  ;;  %s848_s26 = sshra.s32 %s418_s7, 4  ;;  %s431_s27 = int_to_ptr.hbm [resolvable:$true] %s1333_s27  ;;  %s849_s26 = int_to_ptr.hbm [resolvable:$true] %s848_s26 }
  0x9c   : > { %v355_v9 = vmul.f32 %v717_v1, %v354_v7  ;;  %v350_v14 = vrot.slane %v349_v13, 1  ;;  %s850_s13 = scalar_lea.hbm %s849_s26, 1  ;;  %s854_s22 = scalar_lea.hbm %s1463_s18, 8 }
  0x9d   : > { %p851_p6 = scmp.ne.s32.totalorder %s849_s26, %s850_s13  ;;  %p855_p8 = scmp.lt.s32.totalorder %s849_s26, %s1463_s18 }
  0x9e   : > { %v356_v12 = vadd.f32 %v717_v1, %v355_v9  ;;  %v351_v16 = vadd.f32 %v350_v14, %v349_v13  ;;  %p856_p7 = scmp.lt.s32.totalorder %s854_s22, %s850_s13 }
  0x9f   : > { %p852_p12 = pnand %p851_p6, %p1214_p13 }
  0xa0   : > { %v358_v15 = vsel %vm357_vm1, %v717_v1, %v356_v12  ;;  %p857_p9 = por %p856_p7, %p855_p8 }
  0xa1   : > { %v359_v17 = vmul.f32 %v358_v15, %v351_v16  ;;  %p853_p5 = pneg %p852_p12 }
  0xa3   : > { %v361_v18 = vsel %vm360_vm2, %v359_v17, 0.0  ;;  %p858_p0 = pnand %p857_p9, %p853_p5 }
  0xa4   : > { %362 = vadd.xlane.f32.xlu0 %v361_v18 }
 0x117   : > { %v363_v21 = vpop.xlane.xlu0 %362 }
 0x118   : > { %v364_v22 = vadd.f32 1e-05, %v363_v21 }
 0x11a   : > { %718 = vrcp.f32 %v364_v22 }
 0x120   : > { %v719_v23 = vpop.eup %718 }
 0x121   : > { %v366_v24 = vmul.f32 %v719_v23, %v359_v17 }
 0x123   : > { %589 = vmatmul.msk.f32.vlgmr.msra.gmra.mxu0 %vm360_vm2, %v366_v24 }
 0x1a0   : > { %v387_v25 = vpop.f32.mrf.mxu0 }
 0x1a1   : > { %393 = vrot.lane.b32.xlu0 %v387_v25, %s997_s16  ;;  %s401_s16 = scalar_lea.sflag [#allocation7], %s1292_s23 }
 0x213   : > { %v394_v28 = vpop.permute.xlu0 %393 }
 0x214   : > { %397 = vst.msk [vmem:[%s324_s0] sm:$0x1] %vm396_vm4, %v394_v28 }
 0x215   : > { %861 = shalt.err (!%p858_p0)
}
 0x216   : > { %603 = dma.vmem_to_hbm [thread:$0]  (%p1214_p13), %s416_s3, 16, %s418_s7, %s401_s16   ;;  %399 = vst.msk [vmem:[%s1321_s28] sm:$0x1] %vm396_vm4, %v394_v28 }
 0x217   : > { %s405_s0 = scalar_lea.sflag [#allocation13], %s1292_s23  ;;  %s876_s11 = sshra.s32 %s431_s27, 4  ;;  %s877_s11 = int_to_ptr.hbm [resolvable:$true] %s876_s11 }
 0x218   : > { %s878_s24 = scalar_lea.hbm %s877_s11, 1  ;;  %s882_s17 = scalar_lea.hbm %s1464_s21, 8 }
 0x219   : > { %p879_p2 = scmp.ne.s32.totalorder %s877_s11, %s878_s24  ;;  %p883_p1 = scmp.lt.s32.totalorder %s877_s11, %s1464_s21 }
 0x21a   : > { %p884_p10 = scmp.lt.s32.totalorder %s882_s17, %s878_s24 }
 0x21b   : > { %p880_p4 = pnand %p879_p2, %p1214_p13 }
 0x21c   : > { %p885_p11 = por %p884_p10, %p883_p1 }
 0x21d   : > { %p881_p3 = pneg %p880_p4 }
 0x21f   : > { %p886_p6 = pnand %p885_p11, %p881_p3 }
 0x221   : > { %889 = shalt.err (!%p886_p6)
}
 0x222   : > { %604 = dma.vmem_to_hbm [thread:$0]  (%p1214_p13), %s1335_s14, 16, %s431_s27, %s405_s0  }
 0x223 PF: > { %p629_p12 = scmp.ge.s32.totalorder %s990_s12, 2  ;;  %s442_s23 = sand.u32 1, %s978_s9  }
 0x224   : > { %p1465_p5 = scmp.ne.s32.totalorder %s1450_s20, 0  ;;  %s443_s28 = scalar_lea.sflag [#allocation7], %s442_s23 }
 0x226   : > { %p622_p8 = pnand %p629_p12, %p1465_p5 }
 0x228   : > { %p623_p7 = pneg %p622_p8 }
 0x22a   : > { %945 = dma.done.wait (%p623_p7), %s443_s28, 16  }
 0x22b   : > { %947 = vsyncadd (%p623_p7), %s443_s28, 4294967280  ;;  %s452_s3 = scalar_lea.sflag [#allocation13], %s442_s23 }
 0x22c   : > { %949 = dma.done.wait (%p623_p7), %s452_s3, 16  }
 0x22d   : > { %951 = vsyncadd (%p623_p7), %s452_s3, 4294967280  ;;  %s1466_s12 = sld [smem:[#allocation27_spill]]  ;;  %s1472_s0 = smov %s958_s1 }
 0x22e   : > { %s1467_s30 = sld [smem:[#allocation24_spill]]  ;;  %s1473_s1 = smov %s962_s29 }
 0x22f   : > { %s1468_s7 = sld [smem:[#allocation25_spill]]  ;;  %s1474_s29 = smov %s1268_s25 }
 0x230   : > { %s1469_s8 = sld [smem:[#allocation30_spill]]  ;;  %s1475_s9 = smov %s982_s10 }
 0x231   : > { %s1470_s6 = sld [smem:[#allocation26_spill]] }
 0x232   : > { %s1471_s11 = sld [smem:[#allocation31_spill]] }
 0x233   : > { %p39_p13 = scmp.ge.s32.totalorder %s1466_s12, 10  }
 0x235   :  { %41 = sbr.rel (!%p39_p13) target bundleno = 22 (0x16), region = 120 }
 0x237   : > { %s1476_s10 = smov %s1470_s6 }
 0x23a   :  { %457 = vsyncpa [#allocation6], 1 }
 0x23b   :  { %459 = vsyncpa [#allocation6 + $0x1], 1 }
 0x23c   :  { %460 = vsyncpa [#allocation9], 1 }
 0x23d   :  { %462 = vsyncpa [#allocation9 + $0x1], 1 }
 0x23e   :  { %463 = vsyncpa [#allocation7], 1 }
 0x23f   :  { %465 = vsyncpa [#allocation7 + $0x1], 1 }
 0x240   :  { %466 = vsyncpa [#allocation13], 1 }
 0x241   :  { %468 = vsyncpa [#allocation13 + $0x1], 1 }

</bundles_post_ra>
